<compile_context>
chip_gen: v5e
topology: v5e:2x2
jax: 0.10.0
libtpu: 0.0.40
codegen_flags: <defaults>
</compile_context>

<pallas_src>
import math

import jax
import jax.numpy as jnp
from jax.experimental import pallas as pl
from jax.experimental.pallas import tpu as pltpu


def _round_up(x: int, n: int) -> int:
    return ((x + n - 1) // n) * n


def _vmem_capacity_bytes() -> int:
    try:
        return int(pltpu.get_tpu_info().vmem_capacity_bytes)
    except Exception:
        return 64 << 20  # conservative (v7x per-TC VMEM)


def _dense_sigmoid_kernel(x_ref, w_ref, b_ref, o_ref, acc_ref):
    # x_ref: (TM, TK)  w_ref: (d_out_pad, TK)  b_ref: (1, d_out_pad)
    # o_ref: (TM, d_out_pad)  acc_ref: (TM, d_out_pad) f32 scratch
    k = pl.program_id(1)

    @pl.when(k == 0)
    def _():
        acc_ref[...] = jnp.zeros_like(acc_ref)

    # y += x @ W^T : contract on the last dim of both operands (the MXU takes
    # the transposed RHS natively); f32 accumulation regardless of input dtype.
    acc_ref[...] += jax.lax.dot_general(
        x_ref[...], w_ref[...],
        dimension_numbers=(((1,), (1,)), ((), ())),
        preferred_element_type=jnp.float32,
    )

    @pl.when(k == pl.num_programs(1) - 1)
    def _():
        y = acc_ref[...] + b_ref[...].astype(jnp.float32)
        # Fused sigmoid on the f32 accumulator (exp -> EUP, essentially free).
        o_ref[...] = jax.nn.sigmoid(y).astype(o_ref.dtype)


def dense_sigmoid(x, weight, bias, *, tm_max: int = 512, _force_tk: int | None = None):
    """DenseSigmoid forward.

    x:      [..., d_model]
    weight: [d_out, d_model]   (PyTorch nn.Linear layout, NOT transposed)
    bias:   [d_out]
    """
    *lead, d_model = x.shape
    d_out, wk = weight.shape
    assert wk == d_model, (weight.shape, d_model)
    m = math.prod(lead) if lead else 1

    x_bytes = x.dtype.itemsize
    w_bytes = weight.dtype.itemsize
    out_bytes = x_bytes
    # Sublane granularity for the second-minor tile dim: 8 f32 / 16 bf16 / 32 int8.
    gran = max(8, 32 // x_bytes)

    d_out_pad = _round_up(d_out, 128)  # lane-dense output -> unmasked stores

    # ---- VMEM budgeting (generation aware: ~128 MiB v5e/v6e, 64 MiB v7x) ----
    cap = _vmem_capacity_bytes()
    vmem_limit = int(cap * 0.85)   # scoped limit passed to the compiler
    tile_budget = int(cap * 0.70)  # what our own buffers may use

    def vmem_need(tm_, tk_, w_bufs):
        return (2 * tm_ * tk_ * x_bytes                 # x, double-buffered
                + w_bufs * d_out_pad * tk_ * w_bytes    # weight
                + 2 * tm_ * d_out_pad * out_bytes       # output, double-buffered
                + tm_ * d_out_pad * 4                   # f32 accumulator scratch
                + 2 * d_out_pad * 4)                    # bias

    def fits(tm_, tk_, w_bufs):
        return vmem_need(tm_, tk_, w_bufs) <= tile_budget

    tm = _round_up(min(tm_max, _round_up(m, gran)), gran)
    tk = d_model

    if _force_tk is not None:
        tk = _force_tk
        assert tk % 128 == 0 and d_model % tk == 0, (_force_tk, d_model)
    elif not fits(tm, d_model, 1):
        # Resident weight (even single-buffered) does not fit: tile the K
        # (reduction) axis, streaming (d_out_pad, tk) weight slabs per step.
        tk_pick = None
        if d_model % 128 == 0:
            cand = d_model // 2
            while cand >= 128:
                if d_model % cand == 0 and cand % 128 == 0 and fits(tm, cand, 2):
                    tk_pick = cand
                    break
                cand //= 2
        if tk_pick is not None:
            tk = tk_pick
        else:
            # Last resort: shrink the M tile with the full-K resident weight.
            while tm > gran and not fits(tm, d_model, 1):
                tm = _round_up(max(tm // 2, gran), gran)

    m_tiles = pl.cdiv(m, tm)
    k_tiles = d_model // tk

    # ---- operands (NO padding of x along M: ragged last tile is clamped) ----
    x2d = x.reshape(m, d_model)
    w_in = weight
    b2d = bias.reshape(1, d_out)
    if d_out_pad != d_out:
        w_in = jnp.pad(weight, ((0, d_out_pad - d_out), (0, 0)))
        b2d = jnp.pad(b2d, ((0, 0), (0, d_out_pad - d_out)))

    def build(single_buffer_resident):
        w_kwargs = {}
        b_kwargs = {}
        if single_buffer_resident:
            # Constant index_map -> double buffering buys nothing; halve footprint.
            b_kwargs["pipeline_mode"] = pl.Buffered(1)
            if k_tiles == 1:
                w_kwargs["pipeline_mode"] = pl.Buffered(1)
        in_specs = [
            pl.BlockSpec((tm, tk), lambda i, k: (i, k)),                    # x tile
            pl.BlockSpec((d_out_pad, tk), lambda i, k: (0, k), **w_kwargs),  # weight
            pl.BlockSpec((1, d_out_pad), lambda i, k: (0, 0), **b_kwargs),   # bias
        ]
        return pl.pallas_call(
            _dense_sigmoid_kernel,
            out_shape=jax.ShapeDtypeStruct((m, d_out_pad), x.dtype),
            grid_spec=pltpu.PrefetchScalarGridSpec(
                num_scalar_prefetch=0,
                grid=(m_tiles, k_tiles),
                in_specs=in_specs,
                out_specs=pl.BlockSpec((tm, d_out_pad), lambda i, k: (i, 0)),
                scratch_shapes=[pltpu.VMEM((tm, d_out_pad), jnp.float32)],
            ),
            compiler_params=pltpu.CompilerParams(
                # M rows independent -> dual-TC on v7x; K reduction last, "arbitrary".
                dimension_semantics=("parallel", "arbitrary"),
                vmem_limit_bytes=vmem_limit,
            ),
        )

    try:
        out2d = build(True)(x2d, w_in, b2d)
    except Exception:
        # This jax build rejected pipeline_mode=pl.Buffered(1); use default specs.
        out2d = build(False)(x2d, w_in, b2d)

    out = out2d[:, :d_out].reshape(*lead, d_out)
    if d_out == 1:
        out = jnp.squeeze(out, axis=-1)
    return out


if __name__ == "__main__":
    key = jax.random.PRNGKey(0)
    kx, kw, kb, kx2, kw2, kb2 = jax.random.split(key, 6)

    # --- Test 1: [batch, seq, d_model] -> [batch, seq, d_out] -----------------
    batch, seq, d_model, d_out = 2, 8, 32, 16
    x = jax.random.normal(kx, (batch, seq, d_model), dtype=jnp.float32)
    bound = 1.0 / math.sqrt(d_model)
    weight = jax.random.uniform(kw, (d_out, d_model), jnp.float32, -bound, bound)
    bias = jax.random.uniform(kb, (d_out,), jnp.float32, -bound, bound)

    y = jax.block_until_ready(dense_sigmoid(x, weight, bias))
    y_ref = jax.nn.sigmoid(x @ weight.T + bias)
    assert y.shape == (batch, seq, d_out), y.shape
    assert jnp.allclose(y, y_ref, atol=1e-5, rtol=1e-5)

    # --- Test 2: d_out == 1 squeeze path --------------------------------------
    w1, b1 = weight[:1], bias[:1]
    y1 = jax.block_until_ready(dense_sigmoid(x, w1, b1))
    y1_ref = jnp.squeeze(jax.nn.sigmoid(x @ w1.T + b1), axis=-1)
    assert y1.shape == (batch, seq), y1.shape
    assert jnp.allclose(y1, y1_ref, atol=1e-5, rtol=1e-5)

    # --- Test 3: exercise the K-reduction axis + ragged last M tile -----------
    b3n, s3n, dm3, do3 = 3, 5, 256, 8
    x3 = jax.random.normal(kx2, (b3n, s3n, dm3), dtype=jnp.float32)
    bound3 = 1.0 / math.sqrt(dm3)
    w3 = jax.random.uniform(kw2, (do3, dm3), jnp.float32, -bound3, bound3)
    b3 = jax.random.uniform(kb2, (do3,), jnp.float32, -bound3, bound3)
    y3 = jax.block_until_ready(dense_sigmoid(x3, w3, b3, tm_max=8, _force_tk=128))
    y3_ref = jax.nn.sigmoid(x3 @ w3.T + b3)
    assert y3.shape == (b3n, s3n, do3), y3.shape
    assert jnp.allclose(y3, y3_ref, atol=1e-5, rtol=1e-5)

    print("KERNEL_OK")
</pallas_src>

<mosaic_0001>
module attributes {stable_mosaic.version = 11 : i64} {
  func.func @_dense_sigmoid_kernel(%arg0: i32, %arg1: i32, %arg2: memref<16x32xf32, #tpu.memory_space<vmem>>, %arg3: memref<128x32xf32, #tpu.memory_space<vmem>>, %arg4: memref<1x128xf32, #tpu.memory_space<vmem>>, %arg5: memref<16x128xf32, #tpu.memory_space<vmem>>, %arg6: memref<16x128xf32, #tpu.memory_space<vmem>>) attributes {dimension_semantics = [#tpu.dimension_semantics<parallel>, #tpu.dimension_semantics<arbitrary>], iteration_bounds = array<i64: 1, 1>, scalar_prefetch = 0 : i64, scratch_operands = 1 : i64, tpu.core_type = #tpu.core_type<tc>, window_params = [{transform_indices = @transform_0, window_bounds = array<i64: 16, 32>}, {pipeline_mode = #tpu.pipeline_mode<synchronous>, transform_indices = @transform_1, window_bounds = array<i64: 128, 32>}, {pipeline_mode = #tpu.pipeline_mode<synchronous>, transform_indices = @transform_2, window_bounds = array<i64: 1, 128>}, {transform_indices = @transform_3, window_bounds = array<i64: 16, 128>}]} {
    %c0_i32 = arith.constant 0 : i32
    %0 = arith.cmpi eq, %arg1, %c0_i32 : i32
    %1 = arith.extui %0 : i1 to i32
    %c0_i32_0 = arith.constant 0 : i32
    %2 = arith.cmpi ne, %1, %c0_i32_0 : i32
    scf.if %2 {
      %cst_10 = arith.constant 0.000000e+00 : f32
      %12 = vector.broadcast %cst_10 : f32 to vector<16x128xf32>
      %c0_11 = arith.constant 0 : index
      %c0_12 = arith.constant 0 : index
      %13 = vector.load %arg6[%c0_11, %c0_12] : memref<16x128xf32, #tpu.memory_space<vmem>>, vector<16x128xf32>
      tpu.vector_store %arg6[%c0_11, %c0_12], %12 {strides = array<i32>} : memref<16x128xf32, #tpu.memory_space<vmem>>, vector<16x128xf32>,
    } else {
    }
    %c0 = arith.constant 0 : index
    %c0_1 = arith.constant 0 : index
    %3 = vector.load %arg6[%c0, %c0_1] : memref<16x128xf32, #tpu.memory_space<vmem>>, vector<16x128xf32>
    %c0_2 = arith.constant 0 : index
    %c0_3 = arith.constant 0 : index
    %4 = vector.load %arg2[%c0_2, %c0_3] : memref<16x32xf32, #tpu.memory_space<vmem>>, vector<16x32xf32>
    %c0_4 = arith.constant 0 : index
    %c0_5 = arith.constant 0 : index
    %5 = vector.load %arg3[%c0_4, %c0_5] : memref<128x32xf32, #tpu.memory_space<vmem>>, vector<128x32xf32>
    %cst = arith.constant dense<0.000000e+00> : vector<16x128xf32>
    %6 = tpu.matmul %4, %5, %cst {dimension_numbers = #tpu.dot_dimension_numbers<[1], [1], [0], [0], [0, 0, 1, 0], [], []>} : vector<16x32xf32>, vector<128x32xf32>, vector<16x128xf32> -> vector<16x128xf32>
    %7 = arith.addf %3, %6 : vector<16x128xf32>
    %c0_6 = arith.constant 0 : index
    %c0_7 = arith.constant 0 : index
    %8 = vector.load %arg6[%c0_6, %c0_7] : memref<16x128xf32, #tpu.memory_space<vmem>>, vector<16x128xf32>
    tpu.vector_store %arg6[%c0_6, %c0_7], %7 {strides = array<i32>} : memref<16x128xf32, #tpu.memory_space<vmem>>, vector<16x128xf32>,
    %c0_i32_8 = arith.constant 0 : i32
    %9 = arith.cmpi eq, %arg1, %c0_i32_8 : i32
    %10 = arith.extui %9 : i1 to i32
    %c0_i32_9 = arith.constant 0 : i32
    %11 = arith.cmpi ne, %10, %c0_i32_9 : i32
    scf.if %11 {
      %c0_10 = arith.constant 0 : index
      %c0_11 = arith.constant 0 : index
      %12 = vector.load %arg6[%c0_10, %c0_11] : memref<16x128xf32, #tpu.memory_space<vmem>>, vector<16x128xf32>
      %c0_12 = arith.constant 0 : index
      %c0_13 = arith.constant 0 : index
      %13 = vector.load %arg4[%c0_12, %c0_13] : memref<1x128xf32, #tpu.memory_space<vmem>>, vector<1x128xf32>
      %14 = vector.broadcast %13 : vector<1x128xf32> to vector<16x128xf32>
      %15 = arith.addf %12, %14 : vector<16x128xf32>
      %16 = arith.negf %15 : vector<16x128xf32>
      %17 = math.exp %16 : vector<16x128xf32>
      %cst_14 = arith.constant 1.000000e+00 : f32
      %18 = vector.broadcast %cst_14 : f32 to vector<16x128xf32>
      %19 = arith.addf %18, %17 : vector<16x128xf32>
      %20 = arith.divf %18, %19 : vector<16x128xf32>
      %c0_15 = arith.constant 0 : index
      %c0_16 = arith.constant 0 : index
      %21 = vector.load %arg5[%c0_15, %c0_16] : memref<16x128xf32, #tpu.memory_space<vmem>>, vector<16x128xf32>
      tpu.vector_store %arg5[%c0_15, %c0_16], %20 {strides = array<i32>} : memref<16x128xf32, #tpu.memory_space<vmem>>, vector<16x128xf32>,
    } else {
    }
    return
  }
  func.func @transform_0(%arg0: i32, %arg1: i32) -> (i32, i32) {
    %c0_i32 = arith.constant 0 : i32
    return %arg0, %arg1 : i32, i32
  }
  func.func @transform_1(%arg0: i32, %arg1: i32) -> (i32, i32) {
    %c0_i32 = arith.constant 0 : i32
    %c0_i32_0 = arith.constant 0 : i32
    return %c0_i32, %arg1 : i32, i32
  }
  func.func @transform_2(%arg0: i32, %arg1: i32) -> (i32, i32) {
    %c0_i32 = arith.constant 0 : i32
    %c0_i32_0 = arith.constant 0 : i32
    %c0_i32_1 = arith.constant 0 : i32
    return %c0_i32, %c0_i32_0 : i32, i32
  }
  func.func @transform_3(%arg0: i32, %arg1: i32) -> (i32, i32) {
    %c0_i32 = arith.constant 0 : i32
    %c0_i32_0 = arith.constant 0 : i32
    return %arg0, %c0_i32 : i32, i32
  }
}

module attributes {stable_mosaic.version = 11 : i64} {
  func.func @_dense_sigmoid_kernel(%arg0: i32, %arg1: i32, %arg2: memref<16x32xf32, #tpu.memory_space<vmem>>, %arg3: memref<128x32xf32, #tpu.memory_space<vmem>>, %arg4: memref<1x128xf32, #tpu.memory_space<vmem>>, %arg5: memref<16x128xf32, #tpu.memory_space<vmem>>, %arg6: memref<16x128xf32, #tpu.memory_space<vmem>>) attributes {dimension_semantics = [#tpu.dimension_semantics<parallel>, #tpu.dimension_semantics<arbitrary>], iteration_bounds = array<i64: 1, 1>, scalar_prefetch = 0 : i64, scratch_operands = 1 : i64, tpu.core_type = #tpu.core_type<tc>, window_params = [{transform_indices = @transform_0, window_bounds = array<i64: 16, 32>}, {transform_indices = @transform_1, window_bounds = array<i64: 128, 32>}, {pipeline_mode = #tpu.pipeline_mode<synchronous>, transform_indices = @transform_2, window_bounds = array<i64: 1, 128>}, {transform_indices = @transform_3, window_bounds = array<i64: 16, 128>}]} {
    %c0_i32 = arith.constant 0 : i32
    %0 = arith.cmpi eq, %arg1, %c0_i32 : i32
    %1 = arith.extui %0 : i1 to i32
    %c0_i32_0 = arith.constant 0 : i32
    %2 = arith.cmpi ne, %1, %c0_i32_0 : i32
    scf.if %2 {
      %cst_10 = arith.constant 0.000000e+00 : f32
      %12 = vector.broadcast %cst_10 : f32 to vector<16x128xf32>
      %c0_11 = arith.constant 0 : index
      %c0_12 = arith.constant 0 : index
      %13 = vector.load %arg6[%c0_11, %c0_12] : memref<16x128xf32, #tpu.memory_space<vmem>>, vector<16x128xf32>
      tpu.vector_store %arg6[%c0_11, %c0_12], %12 {strides = array<i32>} : memref<16x128xf32, #tpu.memory_space<vmem>>, vector<16x128xf32>,
    } else {
    }
    %c0 = arith.constant 0 : index
    %c0_1 = arith.constant 0 : index
    %3 = vector.load %arg6[%c0, %c0_1] : memref<16x128xf32, #tpu.memory_space<vmem>>, vector<16x128xf32>
    %c0_2 = arith.constant 0 : index
    %c0_3 = arith.constant 0 : index
    %4 = vector.load %arg2[%c0_2, %c0_3] : memref<16x32xf32, #tpu.memory_space<vmem>>, vector<16x32xf32>
    %c0_4 = arith.constant 0 : index
    %c0_5 = arith.constant 0 : index
    %5 = vector.load %arg3[%c0_4, %c0_5] : memref<128x32xf32, #tpu.memory_space<vmem>>, vector<128x32xf32>
    %cst = arith.constant dense<0.000000e+00> : vector<16x128xf32>
    %6 = tpu.matmul %4, %5, %cst {dimension_numbers = #tpu.dot_dimension_numbers<[1], [1], [0], [0], [0, 0, 1, 0], [], []>} : vector<16x32xf32>, vector<128x32xf32>, vector<16x128xf32> -> vector<16x128xf32>
    %7 = arith.addf %3, %6 : vector<16x128xf32>
    %c0_6 = arith.constant 0 : index
    %c0_7 = arith.constant 0 : index
    %8 = vector.load %arg6[%c0_6, %c0_7] : memref<16x128xf32, #tpu.memory_space<vmem>>, vector<16x128xf32>
    tpu.vector_store %arg6[%c0_6, %c0_7], %7 {strides = array<i32>} : memref<16x128xf32, #tpu.memory_space<vmem>>, vector<16x128xf32>,
    %c0_i32_8 = arith.constant 0 : i32
    %9 = arith.cmpi eq, %arg1, %c0_i32_8 : i32
    %10 = arith.extui %9 : i1 to i32
    %c0_i32_9 = arith.constant 0 : i32
    %11 = arith.cmpi ne, %10, %c0_i32_9 : i32
    scf.if %11 {
      %c0_10 = arith.constant 0 : index
      %c0_11 = arith.constant 0 : index
      %12 = vector.load %arg6[%c0_10, %c0_11] : memref<16x128xf32, #tpu.memory_space<vmem>>, vector<16x128xf32>
      %c0_12 = arith.constant 0 : index
      %c0_13 = arith.constant 0 : index
      %13 = vector.load %arg4[%c0_12, %c0_13] : memref<1x128xf32, #tpu.memory_space<vmem>>, vector<1x128xf32>
      %14 = vector.broadcast %13 : vector<1x128xf32> to vector<16x128xf32>
      %15 = arith.addf %12, %14 : vector<16x128xf32>
      %16 = arith.negf %15 : vector<16x128xf32>
      %17 = math.exp %16 : vector<16x128xf32>
      %cst_14 = arith.constant 1.000000e+00 : f32
      %18 = vector.broadcast %cst_14 : f32 to vector<16x128xf32>
      %19 = arith.addf %18, %17 : vector<16x128xf32>
      %20 = arith.divf %18, %19 : vector<16x128xf32>
      %c0_15 = arith.constant 0 : index
      %c0_16 = arith.constant 0 : index
      %21 = vector.load %arg5[%c0_15, %c0_16] : memref<16x128xf32, #tpu.memory_space<vmem>>, vector<16x128xf32>
      tpu.vector_store %arg5[%c0_15, %c0_16], %20 {strides = array<i32>} : memref<16x128xf32, #tpu.memory_space<vmem>>, vector<16x128xf32>,
    } else {
    }
    return
  }
  func.func @transform_0(%arg0: i32, %arg1: i32) -> (i32, i32) {
    %c0_i32 = arith.constant 0 : i32
    return %arg0, %arg1 : i32, i32
  }
  func.func @transform_1(%arg0: i32, %arg1: i32) -> (i32, i32) {
    %c0_i32 = arith.constant 0 : i32
    %c0_i32_0 = arith.constant 0 : i32
    return %c0_i32, %arg1 : i32, i32
  }
  func.func @transform_2(%arg0: i32, %arg1: i32) -> (i32, i32) {
    %c0_i32 = arith.constant 0 : i32
    %c0_i32_0 = arith.constant 0 : i32
    %c0_i32_1 = arith.constant 0 : i32
    return %c0_i32, %c0_i32_0 : i32, i32
  }
  func.func @transform_3(%arg0: i32, %arg1: i32) -> (i32, i32) {
    %c0_i32 = arith.constant 0 : i32
    %c0_i32_0 = arith.constant 0 : i32
    return %arg0, %c0_i32 : i32, i32
  }
}

</mosaic_0001>

<bundles_post_ra>
// kernel: tpu_custom_call.1
= control target key start
LH: loop header
LB: loop body
LE: loop exit
PB: predicated region body
PF: predicated region fallthrough
CT: control target
= control target key end

     0   :  { %vm41_vm0 = vcmask 261120   ;;  %s383_s0 = inlined_call_operand.vmem [shape: f32[16,32], index: 0, kind: input, shape index: {}]   ;;  %s384_s1 = inlined_call_operand.vmem [shape: f32[128,32], index: 1, kind: input, shape index: {}]   ;;  %s385_s2 = inlined_call_operand.vmem [shape: f32[1,128], index: 2, kind: input, shape index: {}]   ;;  %s386_s3 = inlined_call_operand.hbm [shape: f32[16,128], index: 3, kind: output, shape index: {}]  }
   0x1   :  { %v40_v0 = vld [vmem:[%s384_s1 + $0x78] sm:$0xff]  ;;  %v39_v1 = vld [vmem:[%s384_s1 + $0x70] sm:$0xff] }
   0x2   :  { %192 = vmatpush.xpose.msk.msra.mxu0 %vm41_vm0, %v40_v0  ;;  %212 = vmatpush.xpose.msk.msra.mxu1 %vm41_vm0, %v40_v0 }
   0x3   :  { %8 = vsyncpa [#allocation4], 0  ;;  %v38_v2 = vld [vmem:[%s384_s1 + $0x68] sm:$0xff]  ;;  %v37_v3 = vld [vmem:[%s384_s1 + $0x60] sm:$0xff]  ;;  %s180_s24 = sshll.u32 %s386_s3, 4  ;;  %s267_s25 = smov 128   ;;  %s181_s24 = int_to_ptr.hbm [resolvable:$true] %s180_s24 }
   0x4   :  { %v36_v4 = vld [vmem:[%s384_s1 + $0x58] sm:$0xff]  ;;  %v35_v5 = vld [vmem:[%s384_s1 + $0x50] sm:$0xff]  ;;  %v34_v6 = vld [vmem:[%s384_s1 + $0x48] sm:$0xff]  ;;  %s268_s3 = smov 8  }
   0x5   :  { %v33_v7 = vld [vmem:[%s384_s1 + $0x40] sm:$0xff]  ;;  %v32_v8 = vld [vmem:[%s384_s1 + $0x38] sm:$0xff]  ;;  %v31_v9 = vld [vmem:[%s384_s1 + $0x30] sm:$0xff] }
   0x6   :  { %193 = vmatpush.xpose.msk.msra.mxu0 %vm41_vm0, %v39_v1  ;;  %213 = vmatpush.xpose.msk.msra.mxu1 %vm41_vm0, %v39_v1  ;;  %v30_v10 = vld [vmem:[%s384_s1 + $0x28] sm:$0xff]  ;;  %v29_v11 = vld [vmem:[%s384_s1 + $0x20] sm:$0xff]  ;;  %v28_v12 = vld [vmem:[%s384_s1 + $0x18] sm:$0xff] }
   0x7   :  { %v27_v13 = vld [vmem:[%s384_s1 + $0x10] sm:$0xff]  ;;  %v26_v14 = vld [vmem:[%s384_s1 + $0x8] sm:$0xff]  ;;  %v25_v15 = vld [vmem:[%s384_s1] sm:$0xff] }
   0x8   :  { %v23_v16 = vld [vmem:[%s383_s0] sm:$0xff]  ;;  %v24_v17 = vld [vmem:[%s383_s0 + $0x8] sm:$0xff]  ;;  %s266_s0 = smov [#allocation3]  }
   0x9   :  { %v231_v18 = vld [vmem:[%s385_s2] ss:$0 sm:$0xff]  ;;  %s178_s1 = sshll.u32 %s266_s0, 4  ;;  %s179_s1 = int_to_ptr.vmem [resolvable:$true] %s178_s1 }
   0xa   :  { %194 = vmatpush.xpose.msk.msra.mxu0 %vm41_vm0, %v38_v2  ;;  %214 = vmatpush.xpose.msk.msra.mxu1 %vm41_vm0, %v38_v2 }
   0xe   :  { %195 = vmatpush.xpose.msk.msra.mxu0 %vm41_vm0, %v37_v3  ;;  %215 = vmatpush.xpose.msk.msra.mxu1 %vm41_vm0, %v37_v3 }
  0x12   :  { %196 = vmatpush.xpose.msk.msra.mxu0 %vm41_vm0, %v36_v4  ;;  %216 = vmatpush.xpose.msk.msra.mxu1 %vm41_vm0, %v36_v4 }
  0x16   :  { %197 = vmatpush.xpose.msk.msra.mxu0 %vm41_vm0, %v35_v5  ;;  %217 = vmatpush.xpose.msk.msra.mxu1 %vm41_vm0, %v35_v5 }
  0x1a   :  { %198 = vmatpush.xpose.msk.msra.mxu0 %vm41_vm0, %v34_v6  ;;  %218 = vmatpush.xpose.msk.msra.mxu1 %vm41_vm0, %v34_v6 }
  0x1e   :  { %199 = vmatpush.xpose.msk.msra.mxu0 %vm41_vm0, %v33_v7  ;;  %219 = vmatpush.xpose.msk.msra.mxu1 %vm41_vm0, %v33_v7 }
  0x22   :  { %200 = vmatpush.xpose.msk.msra.mxu0 %vm41_vm0, %v32_v8  ;;  %220 = vmatpush.xpose.msk.msra.mxu1 %vm41_vm0, %v32_v8 }
  0x26   :  { %201 = vmatpush.xpose.msk.msra.mxu0 %vm41_vm0, %v31_v9  ;;  %221 = vmatpush.xpose.msk.msra.mxu1 %vm41_vm0, %v31_v9 }
  0x2a   :  { %202 = vmatpush.xpose.msk.msra.mxu0 %vm41_vm0, %v30_v10  ;;  %222 = vmatpush.xpose.msk.msra.mxu1 %vm41_vm0, %v30_v10 }
  0x2e   :  { %203 = vmatpush.xpose.msk.msra.mxu0 %vm41_vm0, %v29_v11  ;;  %223 = vmatpush.xpose.msk.msra.mxu1 %vm41_vm0, %v29_v11 }
  0x32   :  { %204 = vmatpush.xpose.msk.msra.mxu0 %vm41_vm0, %v28_v12  ;;  %224 = vmatpush.xpose.msk.msra.mxu1 %vm41_vm0, %v28_v12 }
  0x36   :  { %205 = vmatpush.xpose.msk.msra.mxu0 %vm41_vm0, %v27_v13  ;;  %225 = vmatpush.xpose.msk.msra.mxu1 %vm41_vm0, %v27_v13 }
  0x3a   :  { %206 = vmatpush.xpose.msk.msra.mxu0 %vm41_vm0, %v26_v14  ;;  %226 = vmatpush.xpose.msk.msra.mxu1 %vm41_vm0, %v26_v14 }
  0x3e   :  { %207 = vmatpush.xpose.msk.msra.mxu0 %vm41_vm0, %v25_v15  ;;  %227 = vmatpush.xpose.msk.msra.mxu1 %vm41_vm0, %v25_v15 }
  0x41   :  { %208 = vmatmul.msk.f32.vlgmr.msra.gmra.mxu0 %vm41_vm0, %v23_v16  ;;  %209 = vmatmul.msk.f32.vlgmr.msra.gmra.mxu1 %vm41_vm0, %v24_v17 }
  0xbe   :  { %v113_v19 = vpop.f32.mrf.mxu0  ;;  %v116_v20 = vpop.f32.mrf.mxu1 }
  0xbf   :  { %v132_v21 = vadd.f32 %v231_v18, %v113_v19  ;;  %v133_v22 = vadd.f32 %v231_v18, %v116_v20 }
  0xc1   :  { %v210_v23 = vmul.f32 -1.442695, %v132_v21  ;;  %v211_v24 = vmul.f32 -1.442695, %v133_v22 }
  0xc3   :  { %232 = vpow2.f32 %v210_v23 }
  0xc4   :  { %234 = vpow2.f32 %v211_v24 }
  0xc9   :  { %v233_v25 = vpop.eup %232 }
  0xca   :  { %v235_v26 = vpop.eup %234  ;;  %v140_v27 = vadd.f32 1.0, %v233_v25 }
  0xcb   :  { %v141_v28 = vadd.f32 1.0, %v235_v26 }
  0xcc   :  { %236 = vrcp.f32 %v140_v27  ;;  %v153_v34 = vand.u32 2147483648, %v140_v27  ;;  %v151_v38 = vand.u32 2147483647, %v140_v27  ;;  %vm147_vm3 = vweird.f32 %v140_v27 }
  0xcd   :  { %238 = vrcp.f32 %v141_v28  ;;  %v168_v37 = vand.u32 2147483648, %v141_v28  ;;  %v166_v40 = vand.u32 2147483647, %v141_v28  ;;  %vm162_vm4 = vweird.f32 %v141_v28 }
  0xce   :  { %v154_v42 = vor.u32 1.1754944e-38, %v153_v34  ;;  %vm152_vm6 = vcmp.eq.f32.partialorder %v151_v38, 8.507059e+37 }
  0xcf   :  { %v169_v44 = vor.u32 1.1754944e-38, %v168_v37  ;;  %vm167_vm8 = vcmp.eq.f32.partialorder %v166_v40, 8.507059e+37 }
  0xd2   :  { %v237_v29 = vpop.eup %236 }
  0xd3   :  { %v239_v30 = vpop.eup %238  ;;  %v143_v31 = vmul.f32 %v237_v29, %v140_v27  ;;  %vm148_vm1 = vweird.f32 %v237_v29 }
  0xd4   :  { %v158_v32 = vmul.f32 %v239_v30, %v141_v28  ;;  %vm163_vm2 = vweird.f32 %v239_v30  ;;  %vm149_vm5 = vmor %vm147_vm3, %vm148_vm1 }
  0xd5   :  { %v144_v33 = vsub.f32 1.0, %v143_v31  ;;  %vm164_vm7 = vmor %vm162_vm4, %vm163_vm2 }
  0xd6   :  { %v159_v35 = vsub.f32 1.0, %v158_v32 }
  0xd7   :  { %v145_v36 = vmul.f32 %v237_v29, %v144_v33 }
  0xd8   :  { %v160_v39 = vmul.f32 %v239_v30, %v159_v35 }
  0xd9   :  { %v146_v41 = vadd.f32 %v237_v29, %v145_v36 }
  0xda   :  { %v161_v43 = vadd.f32 %v239_v30, %v160_v39 }
  0xdb   :  { %v150_v45 = vsel %vm149_vm5, %v237_v29, %v146_v41 }
  0xdc   :  { %v155_v46 = vsel %vm152_vm6, %v154_v42, %v150_v45  ;;  %v165_v47 = vsel %vm164_vm7, %v239_v30, %v161_v43 }
  0xdd   :  { %v170_v48 = vsel %vm167_vm8, %v169_v44, %v165_v47  ;;  %172 = vst [vmem:[#allocation3] sm:$0xff] %v155_v46 }
  0xde   :  { %173 = vst [vmem:[#allocation3 + $0x8] sm:$0xff] %v170_v48 }
  0xdf   :  { %186 = dma.vmem_to_hbm [thread:$0]  %s179_s1, 256, %s181_s24, [#allocation4], %s267_s25, %s267_s25, %s268_s3  }
  0xe0   :  { %264 = dma.done.wait [#allocation4], 256  }
  0xe1   :  { %265 = vsyncadd [#allocation4], 4294967040 }
  0xe2   :  { %191 = vsyncpa [#allocation4], 1 }

// kernel: tpu_custom_call.1
= control target key start
LH: loop header
LB: loop body
LE: loop exit
PB: predicated region body
PF: predicated region fallthrough
CT: control target
= control target key end

     0   :  { %vm41_vm0 = vcmask 261120   ;;  %s383_s0 = inlined_call_operand.vmem [shape: f32[16,32], index: 0, kind: input, shape index: {}]   ;;  %s384_s1 = inlined_call_operand.vmem [shape: f32[128,32], index: 1, kind: input, shape index: {}]   ;;  %s385_s2 = inlined_call_operand.vmem [shape: f32[1,128], index: 2, kind: input, shape index: {}]   ;;  %s386_s3 = inlined_call_operand.hbm [shape: f32[16,128], index: 3, kind: output, shape index: {}]  }
   0x1   :  { %v40_v0 = vld [vmem:[%s384_s1 + $0x78] sm:$0xff]  ;;  %v39_v1 = vld [vmem:[%s384_s1 + $0x70] sm:$0xff] }
   0x2   :  { %192 = vmatpush.xpose.msk.msra.mxu0 %vm41_vm0, %v40_v0  ;;  %212 = vmatpush.xpose.msk.msra.mxu1 %vm41_vm0, %v40_v0 }
   0x3   :  { %8 = vsyncpa [#allocation4], 0  ;;  %v38_v2 = vld [vmem:[%s384_s1 + $0x68] sm:$0xff]  ;;  %v37_v3 = vld [vmem:[%s384_s1 + $0x60] sm:$0xff]  ;;  %s180_s24 = sshll.u32 %s386_s3, 4  ;;  %s267_s25 = smov 128   ;;  %s181_s24 = int_to_ptr.hbm [resolvable:$true] %s180_s24 }
   0x4   :  { %v36_v4 = vld [vmem:[%s384_s1 + $0x58] sm:$0xff]  ;;  %v35_v5 = vld [vmem:[%s384_s1 + $0x50] sm:$0xff]  ;;  %v34_v6 = vld [vmem:[%s384_s1 + $0x48] sm:$0xff]  ;;  %s268_s3 = smov 8  }
   0x5   :  { %v33_v7 = vld [vmem:[%s384_s1 + $0x40] sm:$0xff]  ;;  %v32_v8 = vld [vmem:[%s384_s1 + $0x38] sm:$0xff]  ;;  %v31_v9 = vld [vmem:[%s384_s1 + $0x30] sm:$0xff] }
   0x6   :  { %193 = vmatpush.xpose.msk.msra.mxu0 %vm41_vm0, %v39_v1  ;;  %213 = vmatpush.xpose.msk.msra.mxu1 %vm41_vm0, %v39_v1  ;;  %v30_v10 = vld [vmem:[%s384_s1 + $0x28] sm:$0xff]  ;;  %v29_v11 = vld [vmem:[%s384_s1 + $0x20] sm:$0xff]  ;;  %v28_v12 = vld [vmem:[%s384_s1 + $0x18] sm:$0xff] }
   0x7   :  { %v27_v13 = vld [vmem:[%s384_s1 + $0x10] sm:$0xff]  ;;  %v26_v14 = vld [vmem:[%s384_s1 + $0x8] sm:$0xff]  ;;  %v25_v15 = vld [vmem:[%s384_s1] sm:$0xff] }
   0x8   :  { %v23_v16 = vld [vmem:[%s383_s0] sm:$0xff]  ;;  %v24_v17 = vld [vmem:[%s383_s0 + $0x8] sm:$0xff]  ;;  %s266_s0 = smov [#allocation3]  }
   0x9   :  { %v231_v18 = vld [vmem:[%s385_s2] ss:$0 sm:$0xff]  ;;  %s178_s1 = sshll.u32 %s266_s0, 4  ;;  %s179_s1 = int_to_ptr.vmem [resolvable:$true] %s178_s1 }
   0xa   :  { %194 = vmatpush.xpose.msk.msra.mxu0 %vm41_vm0, %v38_v2  ;;  %214 = vmatpush.xpose.msk.msra.mxu1 %vm41_vm0, %v38_v2 }
   0xe   :  { %195 = vmatpush.xpose.msk.msra.mxu0 %vm41_vm0, %v37_v3  ;;  %215 = vmatpush.xpose.msk.msra.mxu1 %vm41_vm0, %v37_v3 }
  0x12   :  { %196 = vmatpush.xpose.msk.msra.mxu0 %vm41_vm0, %v36_v4  ;;  %216 = vmatpush.xpose.msk.msra.mxu1 %vm41_vm0, %v36_v4 }
  0x16   :  { %197 = vmatpush.xpose.msk.msra.mxu0 %vm41_vm0, %v35_v5  ;;  %217 = vmatpush.xpose.msk.msra.mxu1 %vm41_vm0, %v35_v5 }
  0x1a   :  { %198 = vmatpush.xpose.msk.msra.mxu0 %vm41_vm0, %v34_v6  ;;  %218 = vmatpush.xpose.msk.msra.mxu1 %vm41_vm0, %v34_v6 }
  0x1e   :  { %199 = vmatpush.xpose.msk.msra.mxu0 %vm41_vm0, %v33_v7  ;;  %219 = vmatpush.xpose.msk.msra.mxu1 %vm41_vm0, %v33_v7 }
  0x22   :  { %200 = vmatpush.xpose.msk.msra.mxu0 %vm41_vm0, %v32_v8  ;;  %220 = vmatpush.xpose.msk.msra.mxu1 %vm41_vm0, %v32_v8 }
  0x26   :  { %201 = vmatpush.xpose.msk.msra.mxu0 %vm41_vm0, %v31_v9  ;;  %221 = vmatpush.xpose.msk.msra.mxu1 %vm41_vm0, %v31_v9 }
  0x2a   :  { %202 = vmatpush.xpose.msk.msra.mxu0 %vm41_vm0, %v30_v10  ;;  %222 = vmatpush.xpose.msk.msra.mxu1 %vm41_vm0, %v30_v10 }
  0x2e   :  { %203 = vmatpush.xpose.msk.msra.mxu0 %vm41_vm0, %v29_v11  ;;  %223 = vmatpush.xpose.msk.msra.mxu1 %vm41_vm0, %v29_v11 }
  0x32   :  { %204 = vmatpush.xpose.msk.msra.mxu0 %vm41_vm0, %v28_v12  ;;  %224 = vmatpush.xpose.msk.msra.mxu1 %vm41_vm0, %v28_v12 }
  0x36   :  { %205 = vmatpush.xpose.msk.msra.mxu0 %vm41_vm0, %v27_v13  ;;  %225 = vmatpush.xpose.msk.msra.mxu1 %vm41_vm0, %v27_v13 }
  0x3a   :  { %206 = vmatpush.xpose.msk.msra.mxu0 %vm41_vm0, %v26_v14  ;;  %226 = vmatpush.xpose.msk.msra.mxu1 %vm41_vm0, %v26_v14 }
  0x3e   :  { %207 = vmatpush.xpose.msk.msra.mxu0 %vm41_vm0, %v25_v15  ;;  %227 = vmatpush.xpose.msk.msra.mxu1 %vm41_vm0, %v25_v15 }
  0x41   :  { %208 = vmatmul.msk.f32.vlgmr.msra.gmra.mxu0 %vm41_vm0, %v23_v16  ;;  %209 = vmatmul.msk.f32.vlgmr.msra.gmra.mxu1 %vm41_vm0, %v24_v17 }
  0xbe   :  { %v113_v19 = vpop.f32.mrf.mxu0  ;;  %v116_v20 = vpop.f32.mrf.mxu1 }
  0xbf   :  { %v132_v21 = vadd.f32 %v231_v18, %v113_v19  ;;  %v133_v22 = vadd.f32 %v231_v18, %v116_v20 }
  0xc1   :  { %v210_v23 = vmul.f32 -1.442695, %v132_v21  ;;  %v211_v24 = vmul.f32 -1.442695, %v133_v22 }
  0xc3   :  { %232 = vpow2.f32 %v210_v23 }
  0xc4   :  { %234 = vpow2.f32 %v211_v24 }
  0xc9   :  { %v233_v25 = vpop.eup %232 }
  0xca   :  { %v235_v26 = vpop.eup %234  ;;  %v140_v27 = vadd.f32 1.0, %v233_v25 }
  0xcb   :  { %v141_v28 = vadd.f32 1.0, %v235_v26 }
  0xcc   :  { %236 = vrcp.f32 %v140_v27  ;;  %v153_v34 = vand.u32 2147483648, %v140_v27  ;;  %v151_v38 = vand.u32 2147483647, %v140_v27  ;;  %vm147_vm3 = vweird.f32 %v140_v27 }
  0xcd   :  { %238 = vrcp.f32 %v141_v28  ;;  %v168_v37 = vand.u32 2147483648, %v141_v28  ;;  %v166_v40 = vand.u32 2147483647, %v141_v28  ;;  %vm162_vm4 = vweird.f32 %v141_v28 }
  0xce   :  { %v154_v42 = vor.u32 1.1754944e-38, %v153_v34  ;;  %vm152_vm6 = vcmp.eq.f32.partialorder %v151_v38, 8.507059e+37 }
  0xcf   :  { %v169_v44 = vor.u32 1.1754944e-38, %v168_v37  ;;  %vm167_vm8 = vcmp.eq.f32.partialorder %v166_v40, 8.507059e+37 }
  0xd2   :  { %v237_v29 = vpop.eup %236 }
  0xd3   :  { %v239_v30 = vpop.eup %238  ;;  %v143_v31 = vmul.f32 %v237_v29, %v140_v27  ;;  %vm148_vm1 = vweird.f32 %v237_v29 }
  0xd4   :  { %v158_v32 = vmul.f32 %v239_v30, %v141_v28  ;;  %vm163_vm2 = vweird.f32 %v239_v30  ;;  %vm149_vm5 = vmor %vm147_vm3, %vm148_vm1 }
  0xd5   :  { %v144_v33 = vsub.f32 1.0, %v143_v31  ;;  %vm164_vm7 = vmor %vm162_vm4, %vm163_vm2 }
  0xd6   :  { %v159_v35 = vsub.f32 1.0, %v158_v32 }
  0xd7   :  { %v145_v36 = vmul.f32 %v237_v29, %v144_v33 }
  0xd8   :  { %v160_v39 = vmul.f32 %v239_v30, %v159_v35 }
  0xd9   :  { %v146_v41 = vadd.f32 %v237_v29, %v145_v36 }
  0xda   :  { %v161_v43 = vadd.f32 %v239_v30, %v160_v39 }
  0xdb   :  { %v150_v45 = vsel %vm149_vm5, %v237_v29, %v146_v41 }
  0xdc   :  { %v155_v46 = vsel %vm152_vm6, %v154_v42, %v150_v45  ;;  %v165_v47 = vsel %vm164_vm7, %v239_v30, %v161_v43 }
  0xdd   :  { %v170_v48 = vsel %vm167_vm8, %v169_v44, %v165_v47  ;;  %172 = vst [vmem:[#allocation3] sm:$0xff] %v155_v46 }
  0xde   :  { %173 = vst [vmem:[#allocation3 + $0x8] sm:$0xff] %v170_v48 }
  0xdf   :  { %186 = dma.vmem_to_hbm [thread:$0]  %s179_s1, 256, %s181_s24, [#allocation4], %s267_s25, %s267_s25, %s268_s3  }
  0xe0   :  { %264 = dma.done.wait [#allocation4], 256  }
  0xe1   :  { %265 = vsyncadd [#allocation4], 4294967040 }
  0xe2   :  { %191 = vsyncpa [#allocation4], 1 }

</bundles_post_ra>
